<compile_context>
chip_gen: v7x
topology: tpu7x:2x2x1
jax: 0.10.0
libtpu: 0.0.40
codegen_flags: <defaults>
</compile_context>

<pallas_src>
import functools

import jax
import jax.numpy as jnp
from jax.experimental import pallas as pl
from jax.experimental.pallas import tpu as pltpu

NEG_SLOPE = 0.01        # nn.LeakyReLU() default
LANE = 128              # TPU lane width
SUBLANE = 8             # f32 sublane height
DEFAULT_TM_CAP = 4096   # row-tile cap (multiple of 8); amortizes per-step overhead


def _round_up(x, m):
    return ((x + m - 1) // m) * m


def _mlp_kernel(x_ref, w1_ref, b1_ref, w2_ref, b2_ref, o_ref):
    # x_ref : (tm, in_dim)     VMEM   (f32 or bf16; in_dim may be < 128)
    # w1_ref: (in_dim, hid_p)  VMEM   (PyTorch weight.T, zero-padded on hidden)
    # b1_ref: (1, hid_p)       VMEM   f32
    # w2_ref: (hid_p, out_dim) VMEM
    # b2_ref: (1, out_dim)     VMEM   f32
    # o_ref : (tm, out_dim)    VMEM   mm_dtype (narrow; Pallas masks ragged rows)
    h = jnp.dot(x_ref[...], w1_ref[...], preferred_element_type=jnp.float32)
    h = h + b1_ref[...]                         # f32 elementwise (v5e-safe)
    h = jnp.where(h > 0, h, NEG_SLOPE * h)      # LeakyReLU(0.01)
    # Downcast only the matmul *input* when weights are narrow; accumulation f32.
    out = jnp.dot(h.astype(w2_ref.dtype), w2_ref[...],
                  preferred_element_type=jnp.float32)
    o_ref[...] = (out + b2_ref[...]).astype(o_ref.dtype)


@functools.partial(jax.jit, static_argnames=("tm_cap", "matmul_dtype"))
def swin_keypoint_head(x, w1_t, b1, w2_t, b2, *, tm_cap=DEFAULT_TM_CAP,
                       matmul_dtype=None):
    """x: (..., in_dim).  w1_t: (in, hidden), w2_t: (hidden, out) (PyTorch weight.T).

    Returns (..., out_dim) in the matmul streaming dtype (defaults to x.dtype).
    matmul_dtype=jnp.bfloat16 halves x/weight/output HBM traffic on every TPU
    generation (v5e/v6e/v7x); all bias/activation math and accumulation stay f32.
    """
    in_dim = x.shape[-1]
    hidden_dim = w1_t.shape[1]
    out_dim = w2_t.shape[1]
    lead_shape = x.shape[:-1]

    x2 = x.reshape(-1, in_dim)
    M = x2.shape[0]

    mm_dtype = jnp.dtype(matmul_dtype) if matmul_dtype is not None else jnp.dtype(x.dtype)
    if x2.dtype != mm_dtype:
        # Extra HBM pass; only taken when explicitly asking for a narrower
        # streaming dtype than the incoming activations.
        x2 = x2.astype(mm_dtype)

    # Only the hidden dimension is lane-padded (weights/biases: tiny, one-time).
    # x and the output stay at their true widths — the kernel is HBM-bound and
    # padding them would multiply the streamed bytes.
    hid_p = _round_up(hidden_dim, LANE)

    # Row tiling: big tiles to amortize per-grid-step overhead, but keep >= 2
    # grid steps whenever M allows it so v7x's two TensorCores both get work
    # via the ("parallel",) axis.  The last tile may be ragged; Pallas masks
    # the out-of-bounds rows on store (and they never feed a row reduction).
    if M >= 2 * SUBLANE:
        n_tiles = max(2, pl.cdiv(M, tm_cap))
    else:
        n_tiles = 1
    tm = _round_up(pl.cdiv(M, n_tiles), SUBLANE)
    grid = pl.cdiv(M, tm)

    w1_p = jnp.zeros((in_dim, hid_p), mm_dtype).at[:, :hidden_dim].set(
        w1_t.astype(mm_dtype))
    w2_p = jnp.zeros((hid_p, out_dim), mm_dtype).at[:hidden_dim, :].set(
        w2_t.astype(mm_dtype))
    b1_p = jnp.zeros((1, hid_p), jnp.float32).at[0, :hidden_dim].set(
        b1.astype(jnp.float32))
    b2_p = b2.astype(jnp.float32).reshape(1, out_dim)

    itemsize = mm_dtype.itemsize
    cost = pl.CostEstimate(
        flops=2 * M * (in_dim * hid_p + hid_p * out_dim),
        transcendentals=0,
        bytes_accessed=(M * in_dim * itemsize                         # stream x in
                        + (in_dim * hid_p + hid_p * out_dim) * itemsize  # weights once
                        + (hid_p + out_dim) * 4                          # biases once
                        + M * out_dim * itemsize))                       # stream out

    out = pl.pallas_call(
        _mlp_kernel,
        out_shape=jax.ShapeDtypeStruct((M, out_dim), mm_dtype),
        grid_spec=pltpu.PrefetchScalarGridSpec(
            num_scalar_prefetch=0,
            grid=(grid,),
            in_specs=[
                # x: last block dim equals the full array dim -> legal even for
                # in_dim < 128; no HBM-side lane padding of x.
                pl.BlockSpec((tm, in_dim), lambda i: (i, 0)),
                # Grid-invariant weights/biases: same block index every step, so
                # they are fetched once and stay resident in VMEM.
                pl.BlockSpec((in_dim, hid_p), lambda i: (0, 0)),
                pl.BlockSpec((1, hid_p), lambda i: (0, 0)),
                pl.BlockSpec((hid_p, out_dim), lambda i: (0, 0)),
                pl.BlockSpec((1, out_dim), lambda i: (0, 0)),
            ],
            out_specs=pl.BlockSpec((tm, out_dim), lambda i: (i, 0)),
        ),
        compiler_params=pltpu.CompilerParams(
            dimension_semantics=("parallel",)),
        cost_estimate=cost,
    )(x2, w1_p, b1_p, w2_p, b2_p)

    return out.reshape(*lead_shape, out_dim)


def init_params(key, in_dim, hidden_dim, out_dim, dtype=jnp.float32):
    """Matches nn.init.kaiming_normal_ (fan_in, gain=sqrt(2)) on weights, zeros on
    biases.  Weights returned pre-transposed as (in, out)."""
    k1, k2 = jax.random.split(key)
    w1 = jax.random.normal(k1, (hidden_dim, in_dim), dtype) * jnp.sqrt(2.0 / in_dim)
    w2 = jax.random.normal(k2, (out_dim, hidden_dim), dtype) * jnp.sqrt(2.0 / hidden_dim)
    b1 = jnp.zeros((hidden_dim,), dtype)
    b2 = jnp.zeros((out_dim,), dtype)
    return w1.T, b1, w2.T, b2


def _reference(x, w1_t, b1, w2_t, b2, matmul_dtype=None):
    """Pure-JAX reference of Linear -> LeakyReLU -> Linear, with the same optional
    narrow-dtype matmul inputs as the kernel."""
    if matmul_dtype is not None:
        xd, w1d, w2d = (x.astype(matmul_dtype), w1_t.astype(matmul_dtype),
                        w2_t.astype(matmul_dtype))
    else:
        xd, w1d, w2d = x, w1_t, w2_t
    h = jnp.dot(xd, w1d, preferred_element_type=jnp.float32) + b1
    h = jnp.where(h > 0, h, NEG_SLOPE * h)
    if matmul_dtype is not None:
        h = h.astype(matmul_dtype)
    return jnp.dot(h, w2d, preferred_element_type=jnp.float32) + b2


if __name__ == "__main__":
    key = jax.random.PRNGKey(0)
    kx, kp = jax.random.split(key)

    in_dim, hidden_dim, out_dim = 32, 64, 16
    w1_t, b1, w2_t, b2 = init_params(kp, in_dim, hidden_dim, out_dim)

    # --- Test 1: two-tile grid (megacore-shardable), ragged last tile (M=600). ---
    x_big = jax.random.normal(kx, (2, 300, in_dim), jnp.float32)
    out_big = jax.block_until_ready(swin_keypoint_head(x_big, w1_t, b1, w2_t, b2))
    ref_big = _reference(x_big, w1_t, b1, w2_t, b2)
    assert out_big.shape == (2, 300, out_dim), out_big.shape
    assert out_big.dtype == x_big.dtype, out_big.dtype
    assert jnp.allclose(out_big, ref_big, atol=1e-4, rtol=1e-4), \
        float(jnp.max(jnp.abs(out_big - ref_big)))

    # --- Test 2: tiny input (M=16 -> two 8-row tiles). ---
    x_small = jax.random.normal(jax.random.fold_in(kx, 1), (2, 8, in_dim), jnp.float32)
    out_small = jax.block_until_ready(swin_keypoint_head(x_small, w1_t, b1, w2_t, b2))
    ref_small = _reference(x_small, w1_t, b1, w2_t, b2)
    assert out_small.shape == (2, 8, out_dim), out_small.shape
    assert jnp.allclose(out_small, ref_small, atol=1e-4, rtol=1e-4), \
        float(jnp.max(jnp.abs(out_small - ref_small)))

    # --- Test 3: M not a multiple of the sublane (ragged + masked last tile). ---
    x_rag = jax.random.normal(jax.random.fold_in(kx, 2), (3, 7, in_dim), jnp.float32)
    out_rag = jax.block_until_ready(swin_keypoint_head(x_rag, w1_t, b1, w2_t, b2))
    ref_rag = _reference(x_rag, w1_t, b1, w2_t, b2)
    assert out_rag.shape == (3, 7, out_dim), out_rag.shape
    assert jnp.allclose(out_rag, ref_rag, atol=1e-4, rtol=1e-4), \
        float(jnp.max(jnp.abs(out_rag - ref_rag)))

    # --- Test 4: bf16 streaming path (HBM-bandwidth optimization, all TPU gens). ---
    out_bf16 = jax.block_until_ready(
        swin_keypoint_head(x_big, w1_t, b1, w2_t, b2, matmul_dtype=jnp.bfloat16))
    ref_bf16 = _reference(x_big, w1_t, b1, w2_t, b2, matmul_dtype=jnp.bfloat16)
    assert out_bf16.shape == (2, 300, out_dim), out_bf16.shape
    assert out_bf16.dtype == jnp.bfloat16, out_bf16.dtype
    assert jnp.allclose(out_bf16.astype(jnp.float32), ref_bf16,
                        atol=5e-2, rtol=5e-2), \
        float(jnp.max(jnp.abs(out_bf16.astype(jnp.float32) - ref_bf16)))

    print("KERNEL_OK")
</pallas_src>

<mosaic_0001>
module attributes {stable_mosaic.version = 11 : i64} {
  func.func @_mlp_kernel(%arg0: i32, %arg1: memref<304x32xf32, #tpu.memory_space<vmem>>, %arg2: memref<32x128xf32, #tpu.memory_space<vmem>>, %arg3: memref<1x128xf32, #tpu.memory_space<vmem>>, %arg4: memref<128x16xf32, #tpu.memory_space<vmem>>, %arg5: memref<1x16xf32, #tpu.memory_space<vmem>>, %arg6: memref<304x16xf32, #tpu.memory_space<vmem>>) attributes {dimension_semantics = [#tpu.dimension_semantics<parallel>], iteration_bounds = array<i64: 2>, scalar_prefetch = 0 : i64, scratch_operands = 0 : i64, tpu.core_type = #tpu.core_type<tc>, window_params = [{transform_indices = @transform_0, window_bounds = array<i64: 304, 32>}, {pipeline_mode = #tpu.pipeline_mode<synchronous>, transform_indices = @transform_1, window_bounds = array<i64: 32, 128>}, {pipeline_mode = #tpu.pipeline_mode<synchronous>, transform_indices = @transform_2, window_bounds = array<i64: 1, 128>}, {pipeline_mode = #tpu.pipeline_mode<synchronous>, transform_indices = @transform_3, window_bounds = array<i64: 128, 16>}, {pipeline_mode = #tpu.pipeline_mode<synchronous>, transform_indices = @transform_4, window_bounds = array<i64: 1, 16>}, {transform_indices = @transform_5, window_bounds = array<i64: 304, 16>}]} {
    %c0 = arith.constant 0 : index
    %c0_0 = arith.constant 0 : index
    %0 = vector.load %arg1[%c0, %c0_0] : memref<304x32xf32, #tpu.memory_space<vmem>>, vector<304x32xf32>
    %c0_1 = arith.constant 0 : index
    %c0_2 = arith.constant 0 : index
    %1 = vector.load %arg2[%c0_1, %c0_2] : memref<32x128xf32, #tpu.memory_space<vmem>>, vector<32x128xf32>
    %cst = arith.constant dense<0.000000e+00> : vector<304x128xf32>
    %2 = tpu.matmul %0, %1, %cst {dimension_numbers = #tpu.dot_dimension_numbers<[1], [0], [0], [1], [0, 0, 1, 1], [], []>} : vector<304x32xf32>, vector<32x128xf32>, vector<304x128xf32> -> vector<304x128xf32>
    %c0_3 = arith.constant 0 : index
    %c0_4 = arith.constant 0 : index
    %3 = vector.load %arg3[%c0_3, %c0_4] : memref<1x128xf32, #tpu.memory_space<vmem>>, vector<1x128xf32>
    %4 = vector.broadcast %3 : vector<1x128xf32> to vector<304x128xf32>
    %5 = arith.addf %2, %4 : vector<304x128xf32>
    %cst_5 = arith.constant 0.000000e+00 : f32
    %6 = vector.broadcast %cst_5 : f32 to vector<304x128xf32>
    %7 = arith.cmpf ogt, %5, %6 : vector<304x128xf32>
    %cst_6 = arith.constant 0.00999999977 : f32
    %8 = vector.broadcast %cst_6 : f32 to vector<304x128xf32>
    %9 = arith.mulf %8, %5 : vector<304x128xf32>
    %10 = arith.select %7, %5, %9 : vector<304x128xi1>, vector<304x128xf32>
    %c0_7 = arith.constant 0 : index
    %c0_8 = arith.constant 0 : index
    %11 = vector.load %arg4[%c0_7, %c0_8] : memref<128x16xf32, #tpu.memory_space<vmem>>, vector<128x16xf32>
    %cst_9 = arith.constant dense<0.000000e+00> : vector<304x16xf32>
    %12 = tpu.matmul %10, %11, %cst_9 {dimension_numbers = #tpu.dot_dimension_numbers<[1], [0], [0], [1], [0, 0, 1, 1], [], []>} : vector<304x128xf32>, vector<128x16xf32>, vector<304x16xf32> -> vector<304x16xf32>
    %c0_10 = arith.constant 0 : index
    %c0_11 = arith.constant 0 : index
    %13 = vector.load %arg5[%c0_10, %c0_11] : memref<1x16xf32, #tpu.memory_space<vmem>>, vector<1x16xf32>
    %14 = vector.broadcast %13 : vector<1x16xf32> to vector<304x16xf32>
    %15 = arith.addf %12, %14 : vector<304x16xf32>
    %c0_12 = arith.constant 0 : index
    %c0_13 = arith.constant 0 : index
    %16 = vector.load %arg6[%c0_12, %c0_13] : memref<304x16xf32, #tpu.memory_space<vmem>>, vector<304x16xf32>
    tpu.vector_store %arg6[%c0_12, %c0_13], %15 {strides = array<i32>} : memref<304x16xf32, #tpu.memory_space<vmem>>, vector<304x16xf32>,
    return
  }
  func.func @transform_0(%arg0: i32) -> (i32, i32) {
    %c0_i32 = arith.constant 0 : i32
    %c0_i32_0 = arith.constant 0 : i32
    return %arg0, %c0_i32 : i32, i32
  }
  func.func @transform_1(%arg0: i32) -> (i32, i32) {
    %c0_i32 = arith.constant 0 : i32
    %c0_i32_0 = arith.constant 0 : i32
    %c0_i32_1 = arith.constant 0 : i32
    return %c0_i32, %c0_i32_0 : i32, i32
  }
  func.func @transform_2(%arg0: i32) -> (i32, i32) {
    %c0_i32 = arith.constant 0 : i32
    %c0_i32_0 = arith.constant 0 : i32
    %c0_i32_1 = arith.constant 0 : i32
    return %c0_i32, %c0_i32_0 : i32, i32
  }
  func.func @transform_3(%arg0: i32) -> (i32, i32) {
    %c0_i32 = arith.constant 0 : i32
    %c0_i32_0 = arith.constant 0 : i32
    %c0_i32_1 = arith.constant 0 : i32
    return %c0_i32, %c0_i32_0 : i32, i32
  }
  func.func @transform_4(%arg0: i32) -> (i32, i32) {
    %c0_i32 = arith.constant 0 : i32
    %c0_i32_0 = arith.constant 0 : i32
    %c0_i32_1 = arith.constant 0 : i32
    return %c0_i32, %c0_i32_0 : i32, i32
  }
  func.func @transform_5(%arg0: i32) -> (i32, i32) {
    %c0_i32 = arith.constant 0 : i32
    %c0_i32_0 = arith.constant 0 : i32
    return %arg0, %c0_i32 : i32, i32
  }
}

</mosaic_0001>

<bundles_post_ra>
// kernel: swin_keypoint_head.1
= control target key start
LH: loop header
LB: loop body
LE: loop exit
PB: predicated region body
PF: predicated region fallthrough
CT: control target
= control target key end

     0   :  { %s2037_s18 = smov 0   ;;  %s2039_s19 = smov 0   ;;  %s2526_s0 = inlined_call_operand.vmem [shape: f32[600,32], index: 0, kind: input, shape index: {}]   ;;  %s2527_s1 = inlined_call_operand.vmem [shape: f32[32,128], index: 1, kind: input, shape index: {}]   ;;  %s2528_s2 = inlined_call_operand.vmem [shape: f32[1,128], index: 2, kind: input, shape index: {}]   ;;  %s2529_s3 = inlined_call_operand.vmem [shape: f32[128,16], index: 3, kind: input, shape index: {}]   ;;  %s2530_s4 = inlined_call_operand.vmem [shape: f32[1,16], index: 4, kind: input, shape index: {}]   ;;  %s2531_s5 = inlined_call_operand.vmem [shape: f32[600,16], index: 5, kind: output, shape index: {}]  }
   0x1   :  { %s2041_s20 = smov 0  }
   0x2 LB: > { %s2050_s21 = sadd.s32 4294967295, %s1973_s20   ;;  %s2052_s22 = sadd.s32 1, %s1973_s20   ;;  %s1973_s20 = sphi %s2041_s20, %s2540_s20   ;;  %s1969_s19 = sphi %s2039_s19, %s2539_s19   ;;  %s1965_s18 = sphi %s2037_s18, %s2538_s18  }
   0x3   : > { %s129_s23 = ssub.s32 %s1973_s20, %s2052_s22  ;;  %s132_s24 = sadd.s32 1, %s1969_s19 }
   0x4   : > { %p130_p0 = scmp.eq.s32.totalorder %s129_s23, 0  ;;  %p142_p1 = scmp.ne.s32.totalorder %s1969_s19, %s1965_s18 }
   0x5   : > { %p143_p2 = scmp.eq.s32.totalorder %s2050_s21, 1  ;;  %p1464_p3 = scmp.ge.s32.totalorder %s1973_s20, 1 }
   0x6   : > { %s2060_s25 = scalar_select %p130_p0, %s1969_s19, %s132_s24  }
   0x7   : > { %p2062_p4 = por %p143_p2, %p142_p1  ;;  %p196_p5 = scmp.lt.s32.totalorder %s1973_s20, 3 }
   0x9   : > { %p197_p6 = pnand %p1464_p3, %p196_p5 }
   0xa   : > { %v284_v0 = vld [vmem:[%s2527_s1] sm:$0xff] (!%p197_p6)  ;;  %v285_v1 = vld [vmem:[%s2527_s1 + $0x8] sm:$0xff] (!%p197_p6)  ;;  %v286_v2 = vld [vmem:[%s2527_s1 + $0x10] sm:$0xff] (!%p197_p6)  ;;  %s2076_s8 = smul.u32 (!%p197_p6), 38, %s2050_s21  ;;  %vm295_vm0 = vcmask (!%p197_p6), 261120   ;;  %s224_s14 = sand.u32 (!%p197_p6), 1, %s1965_s18  }
   0xb   : > { %200 = sbr.rel (%p197_p6) target bundleno = 602 (0x25a), region = 40  ;;  %v1769_v3 = vpack.c.bf16 (!%p197_p6), %v285_v1, %v284_v0  ;;  %v287_v4 = vld [vmem:[%s2527_s1 + $0x18] sm:$0xff] (!%p197_p6)  ;;  %v779_v5 = vld [vmem:[%s2529_s3] sm:$0xff] (!%p197_p6)  ;;  %v780_v6 = vld [vmem:[%s2529_s3 + $0x8] sm:$0xff] (!%p197_p6) }
   0xc   : > { %v1773_v7 = vpack.c.bf16 (!%p197_p6), %v287_v4, %v286_v2  ;;  %p232_p7 = scmp.lt.s32.totalorder (!%p197_p6), %s2076_s8, 74  ;;  %v1777_v8 = vpack.c.bf16 (!%p197_p6), %v780_v6, %v779_v5  ;;  %v781_v9 = vld [vmem:[%s2529_s3 + $0x10] sm:$0xff] (!%p197_p6)  ;;  %v782_v10 = vld [vmem:[%s2529_s3 + $0x18] sm:$0xff] (!%p197_p6)  ;;  %v783_v12 = vld [vmem:[%s2529_s3 + $0x20] sm:$0xff] (!%p197_p6)  ;;  %s1825_s15 = smul.u32 (!%p197_p6), 304, %s224_s14 }
   0xd   : > { %1770 = vmatprep.subr.bf16.mxu0 (!%p197_p6), %v1769_v3  ;;  %v1781_v11 = vpack.c.bf16 (!%p197_p6), %v782_v10, %v781_v9  ;;  %v784_v13 = vld [vmem:[%s2529_s3 + $0x28] sm:$0xff] (!%p197_p6)  ;;  %v785_v18 = vld [vmem:[%s2529_s3 + $0x30] sm:$0xff] (!%p197_p6)  ;;  %v786_v19 = vld [vmem:[%s2529_s3 + $0x38] sm:$0xff] (!%p197_p6) }
   0xe   : > { %1772 = vmatpush3.bf16.msra.mxu0 (!%p197_p6), %v1769_v3  ;;  %1809 = vmatprep.subr.bf16.mxu1 (!%p197_p6), %v1777_v8  ;;  %v1785_v17 = vpack.c.bf16 (!%p197_p6), %v784_v13, %v783_v12  ;;  %v1789_v22 = vpack.c.bf16 (!%p197_p6), %v786_v19, %v785_v18  ;;  %v787_v23 = vld [vmem:[%s2529_s3 + $0x40] sm:$0xff] (!%p197_p6)  ;;  %v788_v24 = vld [vmem:[%s2529_s3 + $0x48] sm:$0xff] (!%p197_p6)  ;;  %v789_v28 = vld [vmem:[%s2529_s3 + $0x50] sm:$0xff] (!%p197_p6)  ;;  %s2263_s20 = scalar_lea.vmem (!%p197_p6), [#allocation2], %s1825_s15  }
   0xf   : > { %1774 = vmatprep.subr.bf16.mxu0 (!%p197_p6), %v1773_v7  ;;  %1817 = vmatpush3.bf16.msra.mxu1 (!%p197_p6), %v1777_v8  ;;  %v1793_v27 = vpack.c.bf16 (!%p197_p6), %v788_v24, %v787_v23  ;;  %v790_v29 = vld [vmem:[%s2529_s3 + $0x58] sm:$0xff] (!%p197_p6)  ;;  %v791_v62 = vld [vmem:[%s2529_s3 + $0x60] sm:$0xff] (!%p197_p6)  ;;  %v792_v63 = vld [vmem:[%s2529_s3 + $0x68] sm:$0xff] (!%p197_p6) }
  0x10   : > { %1810 = vmatprep.subr.bf16.mxu1 (!%p197_p6), %v1781_v11  ;;  %v1797_v32 = vpack.c.bf16 (!%p197_p6), %v790_v29, %v789_v28  ;;  %v1801_v0 = vpack.c.bf16 (!%p197_p6), %v792_v63, %v791_v62  ;;  %v793_v1 = vld [vmem:[%s2529_s3 + $0x70] sm:$0xff] (!%p197_p6)  ;;  %v794_v2 = vld [vmem:[%s2529_s3 + $0x78] sm:$0xff] (!%p197_p6)  ;;  %v2215_v4 = vld [vmem:[%s2528_s2] ss:$0 sm:$0xff] (!%p197_p6) }
  0x11   : > { %v1805_v3 = vpack.c.bf16 (!%p197_p6), %v794_v2, %v793_v1 }
  0x12   : > { %s233_s23 = scalar_select %p232_p7, %s2076_s8, 74  ;;  %1776 = vmatpush3.bf16.msra.mxu0 %v1773_v7 }
  0x13   : > { %1778 = vmatprep.subr.bf16.mxu0 %v1777_v8  ;;  %1818 = vmatpush3.bf16.msra.mxu1 %v1781_v11  ;;  %s1104_s18 = ssub.s32 (%p2062_p4), 75, %s2076_s8 }
  0x14   : > { %s1465_s24 = sshll.u32 %s233_s23, 3  ;;  %1811 = vmatprep.subr.bf16.mxu1 %v1785_v17  ;;  %s1518_s23 = smul.u32 (%p2062_p4), 304, %s2050_s21 }
  0x15   : > { %s2104_s9 = scalar_lea.vmem %s2526_s0, %s1465_s24  ;;  %p1105_p8 = scmp.lt.s32.totalorder (%p2062_p4), %s1104_s18, 38 }
  0x16   : > { %v246_v14 = vld [vmem:[%s2104_s9] sm:$0xff]  ;;  %v247_v15 = vld [vmem:[%s2104_s9 + $0x8] sm:$0xff]  ;;  %v248_v16 = vld [vmem:[%s2104_s9 + $0x10] sm:$0xff]  ;;  %s2384_s28 = scalar_lea.vmem (%p2062_p4), %s2531_s5, %s1518_s23  }
  0x17   : > { %1623 = vmatprep.mubr.msk.f32.mxu0 %vm295_vm0, %v246_v14  ;;  %v249_v20 = vld [vmem:[%s2104_s9 + $0x18] sm:$0xff]  ;;  %v250_v21 = vld [vmem:[%s2104_s9 + $0x20] sm:$0xff]  ;;  %1819 = vmatpush3.bf16.msra.mxu1 %v1785_v17  ;;  %v251_v25 = vld [vmem:[%s2104_s9 + $0x28] sm:$0xff] }
  0x18   : > { %1624 = vmatmul.mubr.msk.f32.vlgmr.msra.gmra.mrb[0].mxu0 %vm295_vm0, %v247_v15  ;;  %1812 = vmatprep.subr.bf16.mxu1 %v1789_v22  ;;  %v252_v26 = vld [vmem:[%s2104_s9 + $0x30] sm:$0xff]  ;;  %v253_v30 = vld [vmem:[%s2104_s9 + $0x38] sm:$0xff]  ;;  %v254_v31 = vld [vmem:[%s2104_s9 + $0x40] sm:$0xff] }
  0x19   : > { %1626 = vmatprep.mubr.msk.f32.mxu0 %vm295_vm0, %v248_v16  ;;  %1780 = vmatpush3.bf16.msra.mxu0 %v1777_v8  ;;  %v255_v33 = vld [vmem:[%s2104_s9 + $0x48] sm:$0xff]  ;;  %v256_v34 = vld [vmem:[%s2104_s9 + $0x50] sm:$0xff]  ;;  %v257_v35 = vld [vmem:[%s2104_s9 + $0x58] sm:$0xff] }
  0x1a   : > { %1782 = vmatprep.subr.bf16.mxu0 %v1781_v11  ;;  %v258_v36 = vld [vmem:[%s2104_s9 + $0x60] sm:$0xff]  ;;  %v259_v37 = vld [vmem:[%s2104_s9 + $0x68] sm:$0xff]  ;;  %v260_v38 = vld [vmem:[%s2104_s9 + $0x70] sm:$0xff] }
  0x1b   : > { %1820 = vmatpush3.bf16.msra.mxu1 %v1789_v22  ;;  %v261_v39 = vld [vmem:[%s2104_s9 + $0x78] sm:$0xff]  ;;  %v262_v40 = vld [vmem:[%s2104_s9 + $0x80] sm:$0xff]  ;;  %v263_v41 = vld [vmem:[%s2104_s9 + $0x88] sm:$0xff] }
  0x1c   : > { %1627 = vmatmul.mubr.msk.f32.gmra.mrb[2].mxu0 %vm295_vm0, %v249_v20  ;;  %1813 = vmatprep.subr.bf16.mxu1 %v1793_v27  ;;  %v264_v42 = vld [vmem:[%s2104_s9 + $0x90] sm:$0xff]  ;;  %v265_v43 = vld [vmem:[%s2104_s9 + $0x98] sm:$0xff]  ;;  %v266_v44 = vld [vmem:[%s2104_s9 + $0xa0] sm:$0xff] }
  0x1d   : > { %1629 = vmatprep.mubr.msk.f32.mxu0 %vm295_vm0, %v250_v21  ;;  %1784 = vmatpush3.bf16.msra.mxu0 %v1781_v11  ;;  %v267_v45 = vld [vmem:[%s2104_s9 + $0xa8] sm:$0xff]  ;;  %v268_v46 = vld [vmem:[%s2104_s9 + $0xb0] sm:$0xff]  ;;  %v269_v47 = vld [vmem:[%s2104_s9 + $0xb8] sm:$0xff] }
  0x1e   : > { %1786 = vmatprep.subr.bf16.mxu0 %v1785_v17  ;;  %v270_v48 = vld [vmem:[%s2104_s9 + $0xc0] sm:$0xff]  ;;  %v271_v49 = vld [vmem:[%s2104_s9 + $0xc8] sm:$0xff]  ;;  %v272_v50 = vld [vmem:[%s2104_s9 + $0xd0] sm:$0xff] }
  0x1f   : > { %1821 = vmatpush3.bf16.msra.mxu1 %v1793_v27  ;;  %v273_v51 = vld [vmem:[%s2104_s9 + $0xd8] sm:$0xff]  ;;  %v274_v52 = vld [vmem:[%s2104_s9 + $0xe0] sm:$0xff]  ;;  %v275_v53 = vld [vmem:[%s2104_s9 + $0xe8] sm:$0xff] }
  0x20   : > { %1630 = vmatmul.mubr.msk.f32.gmra.mrb[4].mxu0 %vm295_vm0, %v251_v25  ;;  %1814 = vmatprep.subr.bf16.mxu1 %v1797_v32  ;;  %v276_v54 = vld [vmem:[%s2104_s9 + $0xf0] sm:$0xff]  ;;  %v277_v55 = vld [vmem:[%s2104_s9 + $0xf8] sm:$0xff]  ;;  %v278_v56 = vld [vmem:[%s2104_s9 + $0x100] sm:$0xff] }
  0x21   : > { %1632 = vmatprep.mubr.msk.f32.mxu0 %vm295_vm0, %v252_v26  ;;  %1788 = vmatpush3.bf16.msra.mxu0 %v1785_v17  ;;  %v279_v57 = vld [vmem:[%s2104_s9 + $0x108] sm:$0xff]  ;;  %v280_v58 = vld [vmem:[%s2104_s9 + $0x110] sm:$0xff]  ;;  %v281_v59 = vld [vmem:[%s2104_s9 + $0x118] sm:$0xff] }
  0x22   : > { %1790 = vmatprep.subr.bf16.mxu0 %v1789_v22  ;;  %v282_v60 = vld [vmem:[%s2104_s9 + $0x120] sm:$0xff]  ;;  %v283_v61 = vld [vmem:[%s2104_s9 + $0x128] sm:$0xff] }
  0x23   : > { %1822 = vmatpush3.bf16.msra.mxu1 %v1797_v32 }
  0x24   : > { %1633 = vmatmul.mubr.msk.f32.gmra.mrb[6].mxu0 %vm295_vm0, %v253_v30  ;;  %1815 = vmatprep.subr.bf16.mxu1 %v1801_v0 }
  0x25   : > { %1635 = vmatprep.mubr.msk.f32.mxu0 %vm295_vm0, %v254_v31  ;;  %1792 = vmatpush3.bf16.msra.mxu0 %v1789_v22 }
  0x26   : > { %1794 = vmatprep.subr.bf16.mxu0 %v1793_v27 }
  0x27   : > { %1823 = vmatpush3.bf16.msra.mxu1 %v1801_v0 }
  0x28   : > { %1636 = vmatmul.mubr.msk.f32.gmra.mrb[8].mxu0 %vm295_vm0, %v255_v33  ;;  %1816 = vmatprep.subr.bf16.mxu1 %v1805_v3 }
  0x29   : > { %1638 = vmatprep.mubr.msk.f32.mxu0 %vm295_vm0, %v256_v34  ;;  %1796 = vmatpush3.bf16.msra.mxu0 %v1793_v27 }
  0x2a   : > { %1798 = vmatprep.subr.bf16.mxu0 %v1797_v32 }
  0x2b   : > { %1824 = vmatpush3.bf16.msra.mxu1 %v1805_v3 }
  0x2c   : > { %1639 = vmatmul.mubr.msk.f32.gmra.mrb[10].mxu0 %vm295_vm0, %v257_v35 }
  0x2d   : > { %1641 = vmatprep.mubr.msk.f32.mxu0 %vm295_vm0, %v258_v36  ;;  %1800 = vmatpush3.bf16.msra.mxu0 %v1797_v32 }
  0x2e   : > { %1802 = vmatprep.subr.bf16.mxu0 %v1801_v0 }
  0x30   : > { %1642 = vmatmul.mubr.msk.f32.gmra.mrb[12].mxu0 %vm295_vm0, %v259_v37 }
  0x31   : > { %1644 = vmatprep.mubr.msk.f32.mxu0 %vm295_vm0, %v260_v38  ;;  %1804 = vmatpush3.bf16.msra.mxu0 %v1801_v0 }
  0x32   : > { %1806 = vmatprep.subr.bf16.mxu0 %v1805_v3 }
  0x34   : > { %1645 = vmatmul.mubr.msk.f32.gmra.mrb[14].mxu0 %vm295_vm0, %v261_v39 }
  0x35   : > { %1647 = vmatprep.mubr.msk.f32.mxu0 %vm295_vm0, %v262_v40  ;;  %1808 = vmatpush3.bf16.msra.mxu0 %v1805_v3 }
  0x38   : > { %1648 = vmatmul.mubr.msk.f32.gmra.mrb[16].mxu0 %vm295_vm0, %v263_v41 }
  0x39   : > { %1650 = vmatprep.mubr.msk.f32.mxu0 %vm295_vm0, %v264_v42 }
  0x3c   : > { %1651 = vmatmul.mubr.msk.f32.gmra.mrb[18].mxu0 %vm295_vm0, %v265_v43 }
  0x3d   : > { %1653 = vmatprep.mubr.msk.f32.mxu0 %vm295_vm0, %v266_v44 }
  0x40   : > { %1654 = vmatmul.mubr.msk.f32.gmra.mrb[20].mxu0 %vm295_vm0, %v267_v45 }
  0x41   : > { %1656 = vmatprep.mubr.msk.f32.mxu0 %vm295_vm0, %v268_v46 }
  0x44   : > { %1657 = vmatmul.mubr.msk.f32.gmra.mrb[22].mxu0 %vm295_vm0, %v269_v47 }
  0x45   : > { %1659 = vmatprep.mubr.msk.f32.mxu0 %vm295_vm0, %v270_v48 }
  0x48   : > { %1660 = vmatmul.mubr.msk.f32.gmra.mrb[24].mxu0 %vm295_vm0, %v271_v49 }
  0x49   : > { %1662 = vmatprep.mubr.msk.f32.mxu0 %vm295_vm0, %v272_v50 }
  0x4c   : > { %1663 = vmatmul.mubr.msk.f32.gmra.mrb[26].mxu0 %vm295_vm0, %v273_v51 }
  0x4d   : > { %1665 = vmatprep.mubr.msk.f32.mxu0 %vm295_vm0, %v274_v52 }
  0x50   : > { %1666 = vmatmul.mubr.msk.f32.gmra.mrb[28].mxu0 %vm295_vm0, %v275_v53 }
  0x51   : > { %1668 = vmatprep.mubr.msk.f32.mxu0 %vm295_vm0, %v276_v54 }
  0x54   : > { %1669 = vmatmul.mubr.msk.f32.gmra.mrb[30].mxu0 %vm295_vm0, %v277_v55 }
  0x55   : > { %1671 = vmatprep.mubr.msk.f32.mxu0 %vm295_vm0, %v278_v56 }
  0x58   : > { %1672 = vmatmul.mubr.msk.f32.gmra.mrb[32].mxu0 %vm295_vm0, %v279_v57 }
  0x59   : > { %1674 = vmatprep.mubr.msk.f32.mxu0 %vm295_vm0, %v280_v58 }
  0x5c   : > { %1675 = vmatmul.mubr.msk.f32.gmra.mrb[34].mxu0 %vm295_vm0, %v281_v59 }
  0x5d   : > { %1677 = vmatprep.mubr.msk.f32.mxu0 %vm295_vm0, %v282_v60 }
  0x60   : > { %1678 = vmatmul.mubr.msk.f32.gmra.mrb[36].mxu0 %vm295_vm0, %v283_v61 }
  0xeb   : > { %v1625_v5 = vpop.f32.mrb[0].mxu0 }
  0xec   : > { %v482_v6 = vadd.f32 %v1625_v5, %v2215_v4  ;;  %v476_v7 = vpop.f32.mrb[1].mxu0 }
  0xed   : > { %v477_v8 = vadd.f32 %v2215_v4, %v476_v7 }
  0xee   : > { %v704_v9 = vmul.f32 0.01, %v482_v6  ;;  %vm666_vm1 = vcmp.gt.f32.partialorder %v482_v6, 0.0 }
  0xef   : > { %v703_v10 = vmul.f32 0.01, %v477_v8  ;;  %v1628_v11 = vpop.f32.mrb[2].mxu0  ;;  %vm665_vm2 = vcmp.gt.f32.partialorder %v477_v8, 0.0 }
  0xf0   : > { %v492_v12 = vadd.f32 %v1628_v11, %v2215_v4  ;;  %v486_v13 = vpop.f32.mrb[3].mxu0  ;;  %v742_v16 = vsel %vm666_vm1, %v482_v6, %v704_v9 }
  0xf1   : > { %v487_v14 = vadd.f32 %v2215_v4, %v486_v13  ;;  %v741_v15 = vsel %vm665_vm2, %v477_v8, %v703_v10 }
  0xf2   : > { %v706_v17 = vmul.f32 0.01, %v492_v12  ;;  %1712 = vmatprep.mubr.f32.mxu0 %v741_v15  ;;  %vm668_vm4 = vcmp.gt.f32.partialorder %v492_v12, 0.0 }
  0xf3   : > { %v705_v18 = vmul.f32 0.01, %v487_v14  ;;  %v1631_v19 = vpop.f32.mrb[4].mxu0  ;;  %1713 = vmatmul.mubr.f32.vlgmr.msra.gmra.mrb[38].mxu0 %v742_v16  ;;  %vm667_vm3 = vcmp.gt.f32.partialorder %v487_v14, 0.0 }
  0xf4   : > { %v502_v20 = vadd.f32 %v1631_v19, %v2215_v4  ;;  %v496_v21 = vpop.f32.mrb[5].mxu0  ;;  %v744_v25 = vsel %vm668_vm4, %v492_v12, %v706_v17 }
  0xf5   : > { %v497_v22 = vadd.f32 %v2215_v4, %v496_v21  ;;  %v743_v23 = vsel %vm667_vm3, %v487_v14, %v705_v18 }
  0xf6   : > { %v708_v24 = vmul.f32 0.01, %v502_v20  ;;  %1715 = vmatprep.mubr.f32.mxu0 %v743_v23  ;;  %vm670_vm6 = vcmp.gt.f32.partialorder %v502_v20, 0.0 }
  0xf7   : > { %v707_v26 = vmul.f32 0.01, %v497_v22  ;;  %v1634_v27 = vpop.f32.mrb[6].mxu0  ;;  %1716 = vmatmul.mubr.f32.gmra.mrb[40].mxu0 %v744_v25  ;;  %vm669_vm5 = vcmp.gt.f32.partialorder %v497_v22, 0.0 }
  0xf8   : > { %v512_v28 = vadd.f32 %v1634_v27, %v2215_v4  ;;  %v506_v29 = vpop.f32.mrb[7].mxu0  ;;  %v746_v33 = vsel %vm670_vm6, %v502_v20, %v708_v24 }
  0xf9   : > { %v507_v30 = vadd.f32 %v2215_v4, %v506_v29  ;;  %v745_v31 = vsel %vm669_vm5, %v497_v22, %v707_v26 }
  0xfa   : > { %v710_v32 = vmul.f32 0.01, %v512_v28  ;;  %1718 = vmatprep.mubr.f32.mxu0 %v745_v31  ;;  %vm672_vm8 = vcmp.gt.f32.partialorder %v512_v28, 0.0 }
  0xfb   : > { %v1637_v34 = vpop.f32.mrb[8].mxu0  ;;  %1719 = vmatmul.mubr.f32.gmra.mrb[42].mxu0 %v746_v33  ;;  %vm671_vm7 = vcmp.gt.f32.partialorder %v507_v30, 0.0  ;;  %v709_v35 = vmul.f32 0.01, %v507_v30 }
  0xfc   : > { %v522_v36 = vadd.f32 %v1637_v34, %v2215_v4  ;;  %v516_v37 = vpop.f32.mrb[9].mxu0  ;;  %v748_v41 = vsel %vm672_vm8, %v512_v28, %v710_v32 }
  0xfd   : > { %v517_v38 = vadd.f32 %v2215_v4, %v516_v37  ;;  %v747_v39 = vsel %vm671_vm7, %v507_v30, %v709_v35 }
  0xfe   : > { %v712_v40 = vmul.f32 0.01, %v522_v36  ;;  %1721 = vmatprep.mubr.f32.mxu1 %v747_v39  ;;  %vm674_vm10 = vcmp.gt.f32.partialorder %v522_v36, 0.0 }
  0xff   : > { %v711_v42 = vmul.f32 0.01, %v517_v38  ;;  %v1640_v43 = vpop.f32.mrb[10].mxu0  ;;  %1722 = vmatmul.mubr.f32.vlgmr.msra.gmra.mrb[0].mxu1 %v748_v41  ;;  %vm673_vm9 = vcmp.gt.f32.partialorder %v517_v38, 0.0 }
 0x100   : > { %v532_v44 = vadd.f32 %v1640_v43, %v2215_v4  ;;  %v526_v45 = vpop.f32.mrb[11].mxu0  ;;  %v750_v49 = vsel %vm674_vm10, %v522_v36, %v712_v40 }
 0x101   : > { %v527_v46 = vadd.f32 %v2215_v4, %v526_v45  ;;  %v749_v47 = vsel %vm673_vm9, %v517_v38, %v711_v42 }
 0x102   : > { %v714_v48 = vmul.f32 0.01, %v532_v44  ;;  %1724 = vmatprep.mubr.f32.mxu1 %v749_v47  ;;  %vm676_vm12 = vcmp.gt.f32.partialorder %v532_v44, 0.0 }
 0x103   : > { %v713_v50 = vmul.f32 0.01, %v527_v46  ;;  %v1643_v51 = vpop.f32.mrb[12].mxu0  ;;  %1725 = vmatmul.mubr.f32.gmra.mrb[2].mxu1 %v750_v49  ;;  %vm675_vm11 = vcmp.gt.f32.partialorder %v527_v46, 0.0 }
 0x104   : > { %v542_v52 = vadd.f32 %v1643_v51, %v2215_v4  ;;  %v536_v53 = vpop.f32.mrb[13].mxu0  ;;  %v752_v57 = vsel %vm676_vm12, %v532_v44, %v714_v48 }
 0x105   : > { %v537_v54 = vadd.f32 %v2215_v4, %v536_v53  ;;  %v751_v55 = vsel %vm675_vm11, %v527_v46, %v713_v50 }
 0x106   : > { %v716_v56 = vmul.f32 0.01, %v542_v52  ;;  %1727 = vmatprep.mubr.f32.mxu1 %v751_v55  ;;  %vm678_vm14 = vcmp.gt.f32.partialorder %v542_v52, 0.0 }
 0x107   : > { %v715_v58 = vmul.f32 0.01, %v537_v54  ;;  %v1646_v59 = vpop.f32.mrb[14].mxu0  ;;  %1728 = vmatmul.mubr.f32.gmra.mrb[4].mxu1 %v752_v57  ;;  %vm677_vm13 = vcmp.gt.f32.partialorder %v537_v54, 0.0 }
 0x108   : > { %v552_v60 = vadd.f32 %v1646_v59, %v2215_v4  ;;  %v546_v61 = vpop.f32.mrb[15].mxu0  ;;  %v754_v1 = vsel %vm678_vm14, %v542_v52, %v716_v56 }
 0x109   : > { %v547_v62 = vadd.f32 %v2215_v4, %v546_v61  ;;  %v753_v63 = vsel %vm677_vm13, %v537_v54, %v715_v58 }
 0x10a   : > { %v718_v0 = vmul.f32 0.01, %v552_v60  ;;  %1730 = vmatprep.mubr.f32.mxu1 %v753_v63  ;;  %vm680_vm0 = vcmp.gt.f32.partialorder %v552_v60, 0.0 }
 0x10b   : > { %v717_v2 = vmul.f32 0.01, %v547_v62  ;;  %v1649_v3 = vpop.f32.mrb[16].mxu0  ;;  %1731 = vmatmul.mubr.f32.gmra.mrb[6].mxu1 %v754_v1  ;;  %vm679_vm15 = vcmp.gt.f32.partialorder %v547_v62, 0.0 }
 0x10c   : > { %v562_v5 = vadd.f32 %v1649_v3, %v2215_v4  ;;  %v556_v6 = vpop.f32.mrb[17].mxu0  ;;  %v756_v10 = vsel %vm680_vm0, %v552_v60, %v718_v0 }
 0x10d   : > { %v557_v7 = vadd.f32 %v2215_v4, %v556_v6  ;;  %v755_v8 = vsel %vm679_vm15, %v547_v62, %v717_v2 }
 0x10e   : > { %v720_v9 = vmul.f32 0.01, %v562_v5  ;;  %1733 = vmatprep.mubr.f32.mxu1 %v755_v8  ;;  %vm682_vm2 = vcmp.gt.f32.partialorder %v562_v5, 0.0 }
 0x10f   : > { %v719_v11 = vmul.f32 0.01, %v557_v7  ;;  %v1652_v12 = vpop.f32.mrb[18].mxu0  ;;  %1734 = vmatmul.mubr.f32.gmra.mrb[8].mxu1 %v756_v10  ;;  %vm681_vm1 = vcmp.gt.f32.partialorder %v557_v7, 0.0 }
 0x110   : > { %v572_v13 = vadd.f32 %v1652_v12, %v2215_v4  ;;  %v566_v14 = vpop.f32.mrb[19].mxu0  ;;  %v758_v18 = vsel %vm682_vm2, %v562_v5, %v720_v9 }
 0x111   : > { %v567_v15 = vadd.f32 %v2215_v4, %v566_v14  ;;  %v757_v16 = vsel %vm681_vm1, %v557_v7, %v719_v11 }
 0x112   : > { %v722_v17 = vmul.f32 0.01, %v572_v13  ;;  %1736 = vmatprep.mubr.f32.mxu1 %v757_v16  ;;  %vm684_vm4 = vcmp.gt.f32.partialorder %v572_v13, 0.0 }
 0x113   : > { %v721_v19 = vmul.f32 0.01, %v567_v15  ;;  %v1655_v20 = vpop.f32.mrb[20].mxu0  ;;  %1737 = vmatmul.mubr.f32.gmra.mrb[10].mxu1 %v758_v18  ;;  %vm683_vm3 = vcmp.gt.f32.partialorder %v567_v15, 0.0 }
 0x114   : > { %v582_v21 = vadd.f32 %v1655_v20, %v2215_v4  ;;  %v576_v22 = vpop.f32.mrb[21].mxu0  ;;  %v760_v26 = vsel %vm684_vm4, %v572_v13, %v722_v17 }
 0x115   : > { %v577_v23 = vadd.f32 %v2215_v4, %v576_v22  ;;  %v759_v24 = vsel %vm683_vm3, %v567_v15, %v721_v19 }
 0x116   : > { %v724_v25 = vmul.f32 0.01, %v582_v21  ;;  %1739 = vmatprep.mubr.f32.mxu1 %v759_v24  ;;  %vm686_vm6 = vcmp.gt.f32.partialorder %v582_v21, 0.0 }
 0x117   : > { %v723_v27 = vmul.f32 0.01, %v577_v23  ;;  %v1658_v28 = vpop.f32.mrb[22].mxu0  ;;  %1740 = vmatmul.mubr.f32.gmra.mrb[12].mxu1 %v760_v26  ;;  %vm685_vm5 = vcmp.gt.f32.partialorder %v577_v23, 0.0 }
 0x118   : > { %v592_v29 = vadd.f32 %v1658_v28, %v2215_v4  ;;  %v586_v30 = vpop.f32.mrb[23].mxu0  ;;  %v762_v34 = vsel %vm686_vm6, %v582_v21, %v724_v25 }
 0x119   : > { %v587_v31 = vadd.f32 %v2215_v4, %v586_v30  ;;  %v761_v32 = vsel %vm685_vm5, %v577_v23, %v723_v27 }
 0x11a   : > { %v726_v33 = vmul.f32 0.01, %v592_v29  ;;  %1742 = vmatprep.mubr.f32.mxu1 %v761_v32  ;;  %vm688_vm8 = vcmp.gt.f32.partialorder %v592_v29, 0.0 }
 0x11b   : > { %v725_v35 = vmul.f32 0.01, %v587_v31  ;;  %v1661_v36 = vpop.f32.mrb[24].mxu0  ;;  %1743 = vmatmul.mubr.f32.gmra.mrb[14].mxu1 %v762_v34  ;;  %vm687_vm7 = vcmp.gt.f32.partialorder %v587_v31, 0.0 }
 0x11c   : > { %v602_v37 = vadd.f32 %v1661_v36, %v2215_v4  ;;  %v596_v38 = vpop.f32.mrb[25].mxu0  ;;  %v764_v42 = vsel %vm688_vm8, %v592_v29, %v726_v33 }
 0x11d   : > { %v597_v39 = vadd.f32 %v2215_v4, %v596_v38  ;;  %v763_v40 = vsel %vm687_vm7, %v587_v31, %v725_v35  ;;  %v2259_v31 = vld [vmem:[%s2530_s4] ss:$0 sm:$0xff]  ;;  %vm1057_vm7 = vcmask 130048  }
 0x11e   : > { %v728_v41 = vmul.f32 0.01, %v602_v37  ;;  %1745 = vmatprep.mubr.f32.mxu1 %v763_v40  ;;  %vm690_vm10 = vcmp.gt.f32.partialorder %v602_v37, 0.0 }
 0x11f   : > { %v727_v43 = vmul.f32 0.01, %v597_v39  ;;  %v1664_v44 = vpop.f32.mrb[26].mxu0  ;;  %1746 = vmatmul.mubr.f32.gmra.mrb[16].mxu1 %v764_v42  ;;  %vm689_vm9 = vcmp.gt.f32.partialorder %v597_v39, 0.0 }
 0x120   : > { %v612_v45 = vadd.f32 %v1664_v44, %v2215_v4  ;;  %v606_v46 = vpop.f32.mrb[27].mxu0  ;;  %v766_v50 = vsel %vm690_vm10, %v602_v37, %v728_v41 }
 0x121   : > { %v607_v47 = vadd.f32 %v2215_v4, %v606_v46  ;;  %v765_v48 = vsel %vm689_vm9, %v597_v39, %v727_v43 }
 0x122   : > { %v730_v49 = vmul.f32 0.01, %v612_v45  ;;  %1748 = vmatprep.mubr.f32.mxu1 %v765_v48  ;;  %vm692_vm12 = vcmp.gt.f32.partialorder %v612_v45, 0.0 }
 0x123   : > { %v729_v51 = vmul.f32 0.01, %v607_v47  ;;  %v1667_v52 = vpop.f32.mrb[28].mxu0  ;;  %1749 = vmatmul.mubr.f32.gmra.mrb[18].mxu1 %v766_v50  ;;  %vm691_vm11 = vcmp.gt.f32.partialorder %v607_v47, 0.0 }
 0x124   : > { %v622_v53 = vadd.f32 %v1667_v52, %v2215_v4  ;;  %v616_v54 = vpop.f32.mrb[29].mxu0  ;;  %v768_v58 = vsel %vm692_vm12, %v612_v45, %v730_v49 }
 0x125   : > { %v617_v55 = vadd.f32 %v2215_v4, %v616_v54  ;;  %v767_v56 = vsel %vm691_vm11, %v607_v47, %v729_v51 }
 0x126   : > { %v732_v57 = vmul.f32 0.01, %v622_v53  ;;  %1751 = vmatprep.mubr.f32.mxu1 %v767_v56  ;;  %vm694_vm14 = vcmp.gt.f32.partialorder %v622_v53, 0.0 }
 0x127   : > { %v731_v59 = vmul.f32 0.01, %v617_v55  ;;  %v1670_v60 = vpop.f32.mrb[30].mxu0  ;;  %1752 = vmatmul.mubr.f32.gmra.mrb[20].mxu1 %v768_v58  ;;  %vm693_vm13 = vcmp.gt.f32.partialorder %v617_v55, 0.0 }
 0x128   : > { %v632_v61 = vadd.f32 %v1670_v60, %v2215_v4  ;;  %v626_v62 = vpop.f32.mrb[31].mxu0  ;;  %v770_v2 = vsel %vm694_vm14, %v622_v53, %v732_v57 }
 0x129   : > { %v627_v63 = vadd.f32 %v2215_v4, %v626_v62  ;;  %v769_v0 = vsel %vm693_vm13, %v617_v55, %v731_v59 }
 0x12a   : > { %v734_v1 = vmul.f32 0.01, %v632_v61  ;;  %1754 = vmatprep.mubr.f32.mxu1 %v769_v0  ;;  %vm696_vm0 = vcmp.gt.f32.partialorder %v632_v61, 0.0 }
 0x12b   : > { %v733_v3 = vmul.f32 0.01, %v627_v63  ;;  %v1673_v5 = vpop.f32.mrb[32].mxu0  ;;  %1755 = vmatmul.mubr.f32.gmra.mrb[22].mxu1 %v770_v2  ;;  %vm695_vm15 = vcmp.gt.f32.partialorder %v627_v63, 0.0 }
 0x12c   : > { %v642_v6 = vadd.f32 %v1673_v5, %v2215_v4  ;;  %v636_v7 = vpop.f32.mrb[33].mxu0  ;;  %v772_v11 = vsel %vm696_vm0, %v632_v61, %v734_v1 }
 0x12d   : > { %v637_v8 = vadd.f32 %v2215_v4, %v636_v7  ;;  %v771_v9 = vsel %vm695_vm15, %v627_v63, %v733_v3 }
 0x12e   : > { %v736_v10 = vmul.f32 0.01, %v642_v6  ;;  %1757 = vmatprep.mubr.f32.mxu1 %v771_v9  ;;  %vm698_vm2 = vcmp.gt.f32.partialorder %v642_v6, 0.0 }
 0x12f   : > { %v735_v12 = vmul.f32 0.01, %v637_v8  ;;  %v1676_v13 = vpop.f32.mrb[34].mxu0  ;;  %1758 = vmatmul.mubr.f32.gmra.mrb[24].mxu1 %v772_v11  ;;  %vm697_vm1 = vcmp.gt.f32.partialorder %v637_v8, 0.0 }
 0x130   : > { %v652_v14 = vadd.f32 %v1676_v13, %v2215_v4  ;;  %v646_v15 = vpop.f32.mrb[35].mxu0  ;;  %v774_v19 = vsel %vm698_vm2, %v642_v6, %v736_v10 }
 0x131   : > { %v647_v16 = vadd.f32 %v2215_v4, %v646_v15  ;;  %v773_v17 = vsel %vm697_vm1, %v637_v8, %v735_v12 }
 0x132   : > { %v738_v18 = vmul.f32 0.01, %v652_v14  ;;  %1760 = vmatprep.mubr.f32.mxu1 %v773_v17  ;;  %vm700_vm4 = vcmp.gt.f32.partialorder %v652_v14, 0.0 }
 0x133   : > { %v737_v20 = vmul.f32 0.01, %v647_v16  ;;  %v1679_v21 = vpop.f32.mrb[36].mxu0  ;;  %1761 = vmatmul.mubr.f32.gmra.mrb[26].mxu1 %v774_v19  ;;  %vm699_vm3 = vcmp.gt.f32.partialorder %v647_v16, 0.0 }
 0x134   : > { %v662_v22 = vadd.f32 %v1679_v21, %v2215_v4  ;;  %v656_v23 = vpop.f32.mrb[37].mxu0  ;;  %v776_v27 = vsel %vm700_vm4, %v652_v14, %v738_v18 }
 0x135   : > { %v657_v24 = vadd.f32 %v2215_v4, %v656_v23  ;;  %v775_v25 = vsel %vm699_vm3, %v647_v16, %v737_v20 }
 0x136   : > { %v740_v26 = vmul.f32 0.01, %v662_v22  ;;  %1763 = vmatprep.mubr.f32.mxu1 %v775_v25  ;;  %vm702_vm6 = vcmp.gt.f32.partialorder %v662_v22, 0.0 }
 0x137   : > { %v739_v28 = vmul.f32 0.01, %v657_v24  ;;  %1764 = vmatmul.mubr.f32.gmra.mrb[28].mxu1 %v776_v27  ;;  %vm701_vm5 = vcmp.gt.f32.partialorder %v657_v24, 0.0 }
 0x138   : > { %v778_v30 = vsel %vm702_vm6, %v662_v22, %v740_v26 }
 0x139   : > { %v777_v29 = vsel %vm701_vm5, %v657_v24, %v739_v28 }
 0x13a   : > { %1766 = vmatprep.mubr.f32.mxu1 %v777_v29 }
 0x13b   : > { %1767 = vmatmul.mubr.f32.gmra.mrb[30].mxu1 %v778_v30 }
 0x1c6   : > { %v1714_v4 = vpop.f32.mrb[38].mxu0 }
 0x1c7   : > { %v874_v32 = vadd.f32 %v1714_v4, %v2259_v31  ;;  %v868_v33 = vpop.f32.mrb[39].mxu0 }
 0x1c8   : > { %v869_v34 = vadd.f32 %v2259_v31, %v868_v33 }
 0x1c9   : > { %1059 = vst.msk [vmem:[%s2263_s20 + $0x8] sm:$0xff] %vm1057_vm7, %v874_v32 }
 0x1ca   : > { %1058 = vst.msk [vmem:[%s2263_s20] sm:$0xff] %vm1057_vm7, %v869_v34  ;;  %v1717_v35 = vpop.f32.mrb[40].mxu0 }
 0x1cb   : > { %v884_v36 = vadd.f32 %v1717_v35, %v2259_v31  ;;  %v878_v37 = vpop.f32.mrb[41].mxu0 }
 0x1cc   : > { %v879_v38 = vadd.f32 %v2259_v31, %v878_v37 }
 0x1cd   : > { %1061 = vst.msk [vmem:[%s2263_s20 + $0x18] sm:$0xff] %vm1057_vm7, %v884_v36 }
 0x1ce   : > { %1060 = vst.msk [vmem:[%s2263_s20 + $0x10] sm:$0xff] %vm1057_vm7, %v879_v38  ;;  %v1720_v39 = vpop.f32.mrb[42].mxu0 }
 0x1cf   : > { %v894_v40 = vadd.f32 %v1720_v39, %v2259_v31  ;;  %v888_v41 = vpop.f32.mrb[43].mxu0 }
 0x1d0   : > { %v889_v42 = vadd.f32 %v2259_v31, %v888_v41 }
 0x1d1   : > { %1063 = vst.msk [vmem:[%s2263_s20 + $0x28] sm:$0xff] %vm1057_vm7, %v894_v40 }
 0x1d2   : > { %1062 = vst.msk [vmem:[%s2263_s20 + $0x20] sm:$0xff] %vm1057_vm7, %v889_v42  ;;  %v1723_v43 = vpop.f32.mrb[0].mxu1 }
 0x1d3   : > { %v904_v44 = vadd.f32 %v1723_v43, %v2259_v31  ;;  %v898_v45 = vpop.f32.mrb[1].mxu1 }
 0x1d4   : > { %v899_v46 = vadd.f32 %v2259_v31, %v898_v45 }
 0x1d5   : > { %1065 = vst.msk [vmem:[%s2263_s20 + $0x38] sm:$0xff] %vm1057_vm7, %v904_v44 }
 0x1d6   : > { %1064 = vst.msk [vmem:[%s2263_s20 + $0x30] sm:$0xff] %vm1057_vm7, %v899_v46  ;;  %v1726_v47 = vpop.f32.mrb[2].mxu1 }
 0x1d7   : > { %v914_v48 = vadd.f32 %v1726_v47, %v2259_v31  ;;  %v908_v49 = vpop.f32.mrb[3].mxu1 }
 0x1d8   : > { %v909_v50 = vadd.f32 %v2259_v31, %v908_v49 }
 0x1d9   : > { %1067 = vst.msk [vmem:[%s2263_s20 + $0x48] sm:$0xff] %vm1057_vm7, %v914_v48 }
 0x1da   : > { %1066 = vst.msk [vmem:[%s2263_s20 + $0x40] sm:$0xff] %vm1057_vm7, %v909_v50  ;;  %v1729_v51 = vpop.f32.mrb[4].mxu1 }
 0x1db   : > { %v924_v52 = vadd.f32 %v1729_v51, %v2259_v31  ;;  %v918_v53 = vpop.f32.mrb[5].mxu1 }
 0x1dc   : > { %v919_v54 = vadd.f32 %v2259_v31, %v918_v53 }
 0x1dd   : > { %1069 = vst.msk [vmem:[%s2263_s20 + $0x58] sm:$0xff] %vm1057_vm7, %v924_v52 }
 0x1de   : > { %1068 = vst.msk [vmem:[%s2263_s20 + $0x50] sm:$0xff] %vm1057_vm7, %v919_v54  ;;  %v1732_v55 = vpop.f32.mrb[6].mxu1 }
 0x1df   : > { %v934_v56 = vadd.f32 %v1732_v55, %v2259_v31  ;;  %v928_v57 = vpop.f32.mrb[7].mxu1 }
 0x1e0   : > { %v929_v58 = vadd.f32 %v2259_v31, %v928_v57 }
 0x1e1   : > { %1071 = vst.msk [vmem:[%s2263_s20 + $0x68] sm:$0xff] %vm1057_vm7, %v934_v56 }
 0x1e2   : > { %1070 = vst.msk [vmem:[%s2263_s20 + $0x60] sm:$0xff] %vm1057_vm7, %v929_v58  ;;  %v1735_v59 = vpop.f32.mrb[8].mxu1 }
 0x1e3   : > { %v944_v60 = vadd.f32 %v1735_v59, %v2259_v31  ;;  %v938_v61 = vpop.f32.mrb[9].mxu1 }
 0x1e4   : > { %v939_v62 = vadd.f32 %v2259_v31, %v938_v61 }
 0x1e5   : > { %1073 = vst.msk [vmem:[%s2263_s20 + $0x78] sm:$0xff] %vm1057_vm7, %v944_v60 }
 0x1e6   : > { %1072 = vst.msk [vmem:[%s2263_s20 + $0x70] sm:$0xff] %vm1057_vm7, %v939_v62  ;;  %v1738_v63 = vpop.f32.mrb[10].mxu1 }
 0x1e7   : > { %v954_v0 = vadd.f32 %v1738_v63, %v2259_v31  ;;  %v948_v1 = vpop.f32.mrb[11].mxu1 }
 0x1e8   : > { %v949_v2 = vadd.f32 %v2259_v31, %v948_v1 }
 0x1e9   : > { %1075 = vst.msk [vmem:[%s2263_s20 + $0x88] sm:$0xff] %vm1057_vm7, %v954_v0 }
 0x1ea   : > { %1074 = vst.msk [vmem:[%s2263_s20 + $0x80] sm:$0xff] %vm1057_vm7, %v949_v2  ;;  %v1741_v3 = vpop.f32.mrb[12].mxu1 }
 0x1eb   : > { %v964_v5 = vadd.f32 %v1741_v3, %v2259_v31  ;;  %v958_v6 = vpop.f32.mrb[13].mxu1 }
 0x1ec   : > { %v959_v7 = vadd.f32 %v2259_v31, %v958_v6 }
 0x1ed   : > { %1077 = vst.msk [vmem:[%s2263_s20 + $0x98] sm:$0xff] %vm1057_vm7, %v964_v5 }
 0x1ee   : > { %1076 = vst.msk [vmem:[%s2263_s20 + $0x90] sm:$0xff] %vm1057_vm7, %v959_v7  ;;  %v1744_v8 = vpop.f32.mrb[14].mxu1 }
 0x1ef   : > { %v974_v9 = vadd.f32 %v1744_v8, %v2259_v31  ;;  %v968_v10 = vpop.f32.mrb[15].mxu1 }
 0x1f0   : > { %v969_v11 = vadd.f32 %v2259_v31, %v968_v10 }
 0x1f1   : > { %1079 = vst.msk [vmem:[%s2263_s20 + $0xa8] sm:$0xff] %vm1057_vm7, %v974_v9 }
 0x1f2   : > { %1078 = vst.msk [vmem:[%s2263_s20 + $0xa0] sm:$0xff] %vm1057_vm7, %v969_v11  ;;  %v1747_v12 = vpop.f32.mrb[16].mxu1 }
 0x1f3   : > { %v984_v13 = vadd.f32 %v1747_v12, %v2259_v31  ;;  %v978_v14 = vpop.f32.mrb[17].mxu1 }
 0x1f4   : > { %v979_v15 = vadd.f32 %v2259_v31, %v978_v14 }
 0x1f5   : > { %1081 = vst.msk [vmem:[%s2263_s20 + $0xb8] sm:$0xff] %vm1057_vm7, %v984_v13 }
 0x1f6   : > { %1080 = vst.msk [vmem:[%s2263_s20 + $0xb0] sm:$0xff] %vm1057_vm7, %v979_v15  ;;  %v1750_v16 = vpop.f32.mrb[18].mxu1 }
 0x1f7   : > { %v994_v17 = vadd.f32 %v1750_v16, %v2259_v31  ;;  %v988_v18 = vpop.f32.mrb[19].mxu1 }
 0x1f8   : > { %v989_v19 = vadd.f32 %v2259_v31, %v988_v18 }
 0x1f9   : > { %1083 = vst.msk [vmem:[%s2263_s20 + $0xc8] sm:$0xff] %vm1057_vm7, %v994_v17 }
 0x1fa   : > { %1082 = vst.msk [vmem:[%s2263_s20 + $0xc0] sm:$0xff] %vm1057_vm7, %v989_v19  ;;  %v1753_v20 = vpop.f32.mrb[20].mxu1 }
 0x1fb   : > { %v1004_v21 = vadd.f32 %v1753_v20, %v2259_v31  ;;  %v998_v22 = vpop.f32.mrb[21].mxu1 }
 0x1fc   : > { %v999_v23 = vadd.f32 %v2259_v31, %v998_v22 }
 0x1fd   : > { %1085 = vst.msk [vmem:[%s2263_s20 + $0xd8] sm:$0xff] %vm1057_vm7, %v1004_v21 }
 0x1fe   : > { %1084 = vst.msk [vmem:[%s2263_s20 + $0xd0] sm:$0xff] %vm1057_vm7, %v999_v23  ;;  %v1756_v24 = vpop.f32.mrb[22].mxu1 }
 0x1ff   : > { %v1014_v25 = vadd.f32 %v1756_v24, %v2259_v31  ;;  %v1008_v26 = vpop.f32.mrb[23].mxu1 }
 0x200   : > { %v1009_v27 = vadd.f32 %v2259_v31, %v1008_v26 }
 0x201   : > { %1087 = vst.msk [vmem:[%s2263_s20 + $0xe8] sm:$0xff] %vm1057_vm7, %v1014_v25 }
 0x202   : > { %1086 = vst.msk [vmem:[%s2263_s20 + $0xe0] sm:$0xff] %vm1057_vm7, %v1009_v27  ;;  %v1759_v28 = vpop.f32.mrb[24].mxu1 }
 0x203   : > { %v1024_v29 = vadd.f32 %v1759_v28, %v2259_v31  ;;  %v1018_v30 = vpop.f32.mrb[25].mxu1 }
 0x204   : > { %v1019_v4 = vadd.f32 %v2259_v31, %v1018_v30 }
 0x205   : > { %1089 = vst.msk [vmem:[%s2263_s20 + $0xf8] sm:$0xff] %vm1057_vm7, %v1024_v29 }
 0x206   : > { %1088 = vst.msk [vmem:[%s2263_s20 + $0xf0] sm:$0xff] %vm1057_vm7, %v1019_v4  ;;  %v1762_v32 = vpop.f32.mrb[26].mxu1 }
 0x207   : > { %v1034_v33 = vadd.f32 %v1762_v32, %v2259_v31  ;;  %v1028_v34 = vpop.f32.mrb[27].mxu1 }
 0x208   : > { %v1029_v35 = vadd.f32 %v2259_v31, %v1028_v34 }
 0x209   : > { %1091 = vst.msk [vmem:[%s2263_s20 + $0x108] sm:$0xff] %vm1057_vm7, %v1034_v33 }
 0x20a   : > { %1090 = vst.msk [vmem:[%s2263_s20 + $0x100] sm:$0xff] %vm1057_vm7, %v1029_v35  ;;  %v1765_v36 = vpop.f32.mrb[28].mxu1 }
 0x20b   : > { %v1044_v37 = vadd.f32 %v1765_v36, %v2259_v31  ;;  %v1038_v38 = vpop.f32.mrb[29].mxu1 }
 0x20c   : > { %v1039_v39 = vadd.f32 %v2259_v31, %v1038_v38  ;;  %1102 = sbr.rel (!%p2062_p4) target bundleno = 602 (0x25a), region = 44 }
 0x20d   : > { %1093 = vst.msk [vmem:[%s2263_s20 + $0x118] sm:$0xff] %vm1057_vm7, %v1044_v37 }
 0x20e   : > { %1092 = vst.msk [vmem:[%s2263_s20 + $0x110] sm:$0xff] %vm1057_vm7, %v1039_v39  ;;  %v1768_v40 = vpop.f32.mrb[30].mxu1 }
 0x20f   : > { %v1054_v41 = vadd.f32 %v1768_v40, %v2259_v31  ;;  %v1048_v42 = vpop.f32.mrb[31].mxu1 }
 0x210   : > { %v1049_v43 = vadd.f32 %v2259_v31, %v1048_v42 }
 0x211   : > { %1095 = vst.msk [vmem:[%s2263_s20 + $0x128] sm:$0xff] %vm1057_vm7, %v1054_v41 }
 0x212   : > { %1094 = vst.msk [vmem:[%s2263_s20 + $0x120] sm:$0xff] %vm1057_vm7, %v1049_v43 }
 0x213   : > { %s2542_s18 = smov (!%p1105_p8, %s1104_s18), 38 }
 0x214   : > { %s1506_s29 = sshll.u32 %s2542_s18, 7 }
 0x215   : > { %p1509_p9 = scmp.eq.s32.totalorder %s1506_s29, 0 }
 0x216   : > { %1915 = sdivrem.u32 (!%p1509_p9), %s2542_s18, 38 }
 0x217   : > { %1113 = sbr.rel (%p1509_p9) target bundleno = 602 (0x25a), region = 48 }
 0x21f   : > { %s2390_s26 = spop.drf %1915 }
 0x220   : > { %p1510_p10 = scmp.le.s32.totalorder %s2390_s26, 0 }
 0x221   : > { %s2533_s21 = smov (!%p1510_p10), %s2384_s28  ;;  %s2534_s8 = smov (!%p1510_p10), %s2263_s20 }
 0x222   : > { %1417 = sbr.rel (%p1510_p10) target bundleno = 573 (0x23d), region = 124  ;;  %s2399_s30 = smov (!%p1510_p10), 0  }
 0x223   : > { %s2401_s6 = smov (!%p1510_p10), 0  }
 0x229 LB: >> { %v1251_v31 = vld [vmem:[%s1981_s8] sm:$0xff]  ;;  %v1253_v44 = vld [vmem:[%s1981_s8 + $0x8] sm:$0xff]  ;;  %v1255_v45 = vld [vmem:[%s1981_s8 + $0x10] sm:$0xff]  ;;  %s1327_s7 = sadd.s32 1, %s1985_s30  ;;  %s1245_s6 = sadd.s32 1, %s1989_s6   ;;  %s1989_s6 = sphi %s2401_s6, %s1245_s6   ;;  %s1985_s30 = sphi %s2399_s30, %s2537_s30   ;;  %s1981_s8 = sphi %s2534_s8, %s2536_s8   ;;  %s1977_s21 = sphi %s2533_s21, %s2535_s21  }
 0x22a   : >> { %1252 = vst [vmem:[%s1977_s21] sm:$0xff] %v1251_v31  ;;  %1254 = vst [vmem:[%s1977_s21 + $0x8] sm:$0xff] %v1253_v44  ;;  %v1257_v46 = vld [vmem:[%s1981_s8 + $0x18] sm:$0xff]  ;;  %v1259_v47 = vld [vmem:[%s1981_s8 + $0x20] sm:$0xff]  ;;  %p1328_p11 = scmp.ge.s32.totalorder %s1327_s7, %s2390_s26  ;;  %p1244_p12 = scmp.ge.s32.totalorder %s1245_s6, %s2390_s26 }
 0x22b   : >> { %1256 = vst [vmem:[%s1977_s21 + $0x10] sm:$0xff] %v1255_v45  ;;  %v1261_v48 = vld [vmem:[%s1981_s8 + $0x28] sm:$0xff]  ;;  %1258 = vst [vmem:[%s1977_s21 + $0x18] sm:$0xff] %v1257_v46  ;;  %v1263_v49 = vld [vmem:[%s1981_s8 + $0x30] sm:$0xff] }
 0x22c   : >> { %1260 = vst [vmem:[%s1977_s21 + $0x20] sm:$0xff] %v1259_v47  ;;  %1262 = vst [vmem:[%s1977_s21 + $0x28] sm:$0xff] %v1261_v48  ;;  %v1265_v50 = vld [vmem:[%s1981_s8 + $0x38] sm:$0xff]  ;;  %v1267_v51 = vld [vmem:[%s1981_s8 + $0x40] sm:$0xff]  ;;  %s2544_s7 = smov (%p1328_p11, %s1327_s7), 0 }
 0x22d   : >> { %1264 = vst [vmem:[%s1977_s21 + $0x30] sm:$0xff] %v1263_v49  ;;  %1266 = vst [vmem:[%s1977_s21 + $0x38] sm:$0xff] %v1265_v50  ;;  %v1269_v52 = vld [vmem:[%s1981_s8 + $0x48] sm:$0xff]  ;;  %v1271_v53 = vld [vmem:[%s1981_s8 + $0x50] sm:$0xff]  ;;  %s1330_s10 = smul.u32 304, %s2544_s7  ;;  %s2537_s30 = smov %s2544_s7 }
 0x22e   : >> { %1268 = vst [vmem:[%s1977_s21 + $0x40] sm:$0xff] %v1267_v51  ;;  %v1273_v54 = vld [vmem:[%s1981_s8 + $0x58] sm:$0xff]  ;;  %1270 = vst [vmem:[%s1977_s21 + $0x48] sm:$0xff] %v1269_v52  ;;  %v1275_v55 = vld [vmem:[%s1981_s8 + $0x60] sm:$0xff] }
 0x22f   : >> { %1272 = vst [vmem:[%s1977_s21 + $0x50] sm:$0xff] %v1271_v53  ;;  %1274 = vst [vmem:[%s1977_s21 + $0x58] sm:$0xff] %v1273_v54  ;;  %v1277_v56 = vld [vmem:[%s1981_s8 + $0x68] sm:$0xff]  ;;  %v1279_v57 = vld [vmem:[%s1981_s8 + $0x70] sm:$0xff]  ;;  %s2463_s11 = scalar_lea.vmem %s2263_s20, %s1330_s10 [#allocation2]   ;;  %s2466_s9 = scalar_lea.vmem %s2384_s28, %s1330_s10  }
 0x230   : >> { %1276 = vst [vmem:[%s1977_s21 + $0x60] sm:$0xff] %v1275_v55  ;;  %1278 = vst [vmem:[%s1977_s21 + $0x68] sm:$0xff] %v1277_v56  ;;  %v1281_v58 = vld [vmem:[%s1981_s8 + $0x78] sm:$0xff]  ;;  %v1283_v59 = vld [vmem:[%s1981_s8 + $0x80] sm:$0xff] }
 0x231   : >> { %1280 = vst [vmem:[%s1977_s21 + $0x70] sm:$0xff] %v1279_v57  ;;  %v1285_v60 = vld [vmem:[%s1981_s8 + $0x88] sm:$0xff]  ;;  %1282 = vst [vmem:[%s1977_s21 + $0x78] sm:$0xff] %v1281_v58  ;;  %v1287_v61 = vld [vmem:[%s1981_s8 + $0x90] sm:$0xff] }
 0x232   : >> { %1284 = vst [vmem:[%s1977_s21 + $0x80] sm:$0xff] %v1283_v59  ;;  %1286 = vst [vmem:[%s1977_s21 + $0x88] sm:$0xff] %v1285_v60  ;;  %v1289_v62 = vld [vmem:[%s1981_s8 + $0x98] sm:$0xff]  ;;  %v1291_v63 = vld [vmem:[%s1981_s8 + $0xa0] sm:$0xff] }
 0x233   : >> { %1288 = vst [vmem:[%s1977_s21 + $0x90] sm:$0xff] %v1287_v61  ;;  %1290 = vst [vmem:[%s1977_s21 + $0x98] sm:$0xff] %v1289_v62  ;;  %v1293_v0 = vld [vmem:[%s1981_s8 + $0xa8] sm:$0xff]  ;;  %v1295_v1 = vld [vmem:[%s1981_s8 + $0xb0] sm:$0xff] }
 0x234   : >> { %1292 = vst [vmem:[%s1977_s21 + $0xa0] sm:$0xff] %v1291_v63  ;;  %v1297_v2 = vld [vmem:[%s1981_s8 + $0xb8] sm:$0xff]  ;;  %1294 = vst [vmem:[%s1977_s21 + $0xa8] sm:$0xff] %v1293_v0  ;;  %v1299_v3 = vld [vmem:[%s1981_s8 + $0xc0] sm:$0xff] }
 0x235   : >> { %1296 = vst [vmem:[%s1977_s21 + $0xb0] sm:$0xff] %v1295_v1  ;;  %1298 = vst [vmem:[%s1977_s21 + $0xb8] sm:$0xff] %v1297_v2  ;;  %v1301_v5 = vld [vmem:[%s1981_s8 + $0xc8] sm:$0xff]  ;;  %v1303_v6 = vld [vmem:[%s1981_s8 + $0xd0] sm:$0xff] }
 0x236   : >> { %1300 = vst [vmem:[%s1977_s21 + $0xc0] sm:$0xff] %v1299_v3  ;;  %1302 = vst [vmem:[%s1977_s21 + $0xc8] sm:$0xff] %v1301_v5  ;;  %v1305_v7 = vld [vmem:[%s1981_s8 + $0xd8] sm:$0xff]  ;;  %v1307_v8 = vld [vmem:[%s1981_s8 + $0xe0] sm:$0xff]  ;;  %1247 = sbr.rel (!%p1244_p12) target bundleno = 553 (0x229), region = 130 }
 0x237   : >> { %1304 = vst [vmem:[%s1977_s21 + $0xd0] sm:$0xff] %v1303_v6  ;;  %v1309_v9 = vld [vmem:[%s1981_s8 + $0xe8] sm:$0xff]  ;;  %1306 = vst [vmem:[%s1977_s21 + $0xd8] sm:$0xff] %v1305_v7  ;;  %v1311_v10 = vld [vmem:[%s1981_s8 + $0xf0] sm:$0xff] }
 0x238   : >> { %1308 = vst [vmem:[%s1977_s21 + $0xe0] sm:$0xff] %v1307_v8  ;;  %1310 = vst [vmem:[%s1977_s21 + $0xe8] sm:$0xff] %v1309_v9  ;;  %v1313_v11 = vld [vmem:[%s1981_s8 + $0xf8] sm:$0xff]  ;;  %v1315_v12 = vld [vmem:[%s1981_s8 + $0x100] sm:$0xff] }
 0x239   : >> { %1312 = vst [vmem:[%s1977_s21 + $0xf0] sm:$0xff] %v1311_v10  ;;  %1314 = vst [vmem:[%s1977_s21 + $0xf8] sm:$0xff] %v1313_v11  ;;  %v1317_v13 = vld [vmem:[%s1981_s8 + $0x108] sm:$0xff]  ;;  %v1319_v14 = vld [vmem:[%s1981_s8 + $0x110] sm:$0xff] }
 0x23a   : >> { %1316 = vst [vmem:[%s1977_s21 + $0x100] sm:$0xff] %v1315_v12  ;;  %v1321_v15 = vld [vmem:[%s1981_s8 + $0x118] sm:$0xff]  ;;  %1318 = vst [vmem:[%s1977_s21 + $0x108] sm:$0xff] %v1317_v13  ;;  %v1323_v16 = vld [vmem:[%s1981_s8 + $0x120] sm:$0xff] }
 0x23b   : >> { %1320 = vst [vmem:[%s1977_s21 + $0x110] sm:$0xff] %v1319_v14  ;;  %1322 = vst [vmem:[%s1977_s21 + $0x118] sm:$0xff] %v1321_v15  ;;  %v1325_v17 = vld [vmem:[%s1981_s8 + $0x128] sm:$0xff]  ;;  %s2536_s8 = smov %s2463_s11 }
 0x23c   : >> { %1324 = vst [vmem:[%s1977_s21 + $0x120] sm:$0xff] %v1323_v16  ;;  %1326 = vst [vmem:[%s1977_s21 + $0x128] sm:$0xff] %v1325_v17  ;;  %s2535_s21 = smov %s2466_s9 }
 0x23d PF: > { %1917 = sdivrem.u32 %s2542_s18, 38 }
 0x23e   : > { %s1511_s12 = smul.u32 304, %s2390_s26 }
 0x240   : > { %s1338_s13 = scalar_lea.vmem %s2263_s20, %s1511_s12 [#allocation2]   ;;  %s1340_s14 = scalar_lea.vmem %s2384_s28, %s1511_s12  }
 0x246   : > { %s1918_s15 = spop.drf %1917 }
 0x247   : > { %p1513_p13 = scmp.le.s32.totalorder %s1918_s15, 0 }
 0x248   : > { %s1991_s16 = smov (!%p1513_p13), %s1340_s14   ;;  %s1995_s17 = smov (!%p1513_p13), %s1338_s13  }
 0x249   : > { %1431 = sbr.rel (%p1513_p13) target bundleno = 602 (0x25a), region = 135  ;;  %s1999_s23 = smov (!%p1513_p13), 0  }
 0x24a   : > { %s2003_s24 = smov (!%p1513_p13), 0  }
 0x250 LB: >> { %v1350_v18 = vld [vmem:[%s1997_s17] sm:$0xff]  ;;  %s1352_s27 = sadd.s32 1, %s2001_s23  ;;  %s1344_s24 = sadd.s32 1, %s2005_s24   ;;  %s2005_s24 = sphi %s2003_s24, %s1344_s24   ;;  %s2001_s23 = sphi %s1999_s23, %s2000_s23   ;;  %s1997_s17 = sphi %s1995_s17, %s1357_s17   ;;  %s1993_s16 = sphi %s1991_s16, %s1358_s16  }
 0x251   : >> { %1351 = vst [vmem:[%s1993_s16] sm:$0xff] %v1350_v18  ;;  %p1353_p0 = scmp.ge.s32.totalorder %s1352_s27, %s1918_s15  ;;  %p1343_p1 = scmp.ge.s32.totalorder %s1344_s24, %s1918_s15 }
 0x253   : >> { %s2546_s27 = smov (%p1353_p0, %s1352_s27), 0  ;;  %1346 = sbr.rel (!%p1343_p1) target bundleno = 592 (0x250), region = 141 }
 0x254   : >> { %s1514_s20 = sshll.u32 %s2546_s27, 3  ;;  %s2000_s23 = smov %s2546_s27  }
 0x255   : >> { %s1357_s17 = scalar_lea.vmem %s1338_s13, %s1514_s20 [#allocation2]   ;;  %s1358_s16 = scalar_lea.vmem %s1340_s14, %s1514_s20  }
 0x25a PF: > { %p12_p2 = scmp.ge.s32.totalorder %s2052_s22, 4   ;;  %s2538_s18 = smov %s1969_s19 }
 0x25b   : > { %s2539_s19 = smov %s2060_s25  ;;  %s2540_s20 = smov %s2052_s22 }
 0x25c   :  { %14 = sbr.rel (!%p12_p2) target bundleno = 2 (0x2), region = 152 }

</bundles_post_ra>
